<compile_context>
chip_gen: v5e
topology: v5e:2x2
jax: 0.10.0
libtpu: 0.0.40
codegen_flags: <defaults>
</compile_context>

<pallas_src>
import functools

import jax
import jax.numpy as jnp
from jax import lax
from jax.experimental import pallas as pl
from jax.experimental.pallas import tpu as pltpu


def _down_kernel(xq_ref, w1_ref, b1_ref, w2_ref, b2_ref, o_ref, mid_ref,
                 *, bt, wq, wo, ho, c1, c2):
    """`bt` images per grid step, channels on sublanes / flattened spatial on lanes.

    xq_ref : [bt, 4, C_in, flat_len] bf16   2x2 pool candidates of the 2-zero-padded
                                            input, flattened over (Hq, Wq);
                                            flat_len = Hq*Wq + 2.
    w1_ref : [9, C1, C_in] bf16             conv1 weights (BN1 folded), tap-major.
    b1_ref : [C1, 1] f32                    conv1 bias (BN1 folded).
    w2_ref : [9, C2, C1] bf16, b2_ref: [C2, 1] f32   same for conv2 / BN2.
    o_ref  : [bt, C2, M] f32                M = Ho*Wq "wide" output columns
                                            (garbage cols sliced off in the wrapper).
    mid_ref: [C1, flat_len] bf16            VMEM scratch: flattened, zero-ring-padded
                                            conv1 activation fed to conv2.
    """
    m_wide = ho * wq
    flat_len = mid_ref.shape[1]
    ring = wq + 1                    # head / tail pad length of the flattened ring

    # ---- per-step constants, hoisted out of the image loop ----
    bias1 = jnp.broadcast_to(b1_ref[...], (c1, m_wide))          # f32 acc init
    bias2 = jnp.broadcast_to(b2_ref[...], (c2, m_wide))
    col = lax.broadcasted_iota(jnp.int32, (c1, m_wide), 1)
    maskf = ((col % wq) < wo).astype(jnp.float32)                # 1.0 on valid cols
    zero_ring = jnp.zeros((c1, ring), dtype=mid_ref.dtype)

    for b in range(bt):
        # ---- MaxPool2d(2): max over the four pre-gathered window candidates ----
        pooled = jnp.maximum(jnp.maximum(xq_ref[b, 0], xq_ref[b, 1]),
                             jnp.maximum(xq_ref[b, 2], xq_ref[b, 3]))
        # pooled: [C_in, flat_len] bf16 (pooled image + 1-ring of zeros, flattened)

        # ---- Conv1(3x3) + folded BN1: 9 lane-shifted bf16 matmuls, f32 accum ----
        acc1 = bias1
        for kh in range(3):
            for kw in range(3):
                off = kh * wq + kw
                acc1 = acc1 + jnp.dot(w1_ref[kh * 3 + kw],
                                      pooled[:, off:off + m_wide],
                                      preferred_element_type=jnp.float32)
        act1 = jnp.maximum(acc1, 0.01 * acc1)        # LeakyReLU(0.01)
        act1 = act1 * maskf                          # zero cross-row garbage cols

        # ---- re-pad the intermediate (zero only the rings; interior overwritten) ----
        mid_ref[:, 0:ring] = zero_ring
        mid_ref[:, ring:ring + m_wide] = act1.astype(mid_ref.dtype)
        mid_ref[:, ring + m_wide:flat_len] = zero_ring
        mid = mid_ref[...]                           # [C1, flat_len] bf16

        # ---- Conv2(3x3, pad=1) + folded BN2 ----
        acc2 = bias2
        for kh in range(3):
            for kw in range(3):
                off = kh * wq + kw
                acc2 = acc2 + jnp.dot(w2_ref[kh * 3 + kw],
                                      mid[:, off:off + m_wide],
                                      preferred_element_type=jnp.float32)
        out = jnp.maximum(acc2, 0.01 * acc2)         # LeakyReLU(0.01)
        o_ref[b] = out.astype(o_ref.dtype)


def down_forward(x, p, *, eps=1e-5, bt=1, compute_dtype=jnp.bfloat16):
    """x: [N, C_in, H, W] NCHW. Returns [N, C_out, H/2, W/2] (PyTorch `Down`, eval BN).

    bt = images per grid step (raise on v6e / small images to amortize per-step cost).
    """
    n, c_in, h, w = x.shape
    assert h % 2 == 0 and w % 2 == 0
    assert n % bt == 0
    c1 = p["w1"].shape[0]
    c2 = p["w2"].shape[0]
    ho, wo = h // 2, w // 2          # spatial size after the 2x2 maxpool
    hq, wq = ho + 2, wo + 2          # pooled size + 1-ring of conv padding
    m_wide = ho * wq                 # "wide" (un-trimmed) flattened conv output cols
    flat_len = hq * wq + 2           # +2 keeps the last (kh=2,kw=2) tap slice in bounds

    # ---- layout in the wrapper (single fused XLA copy): cast bf16, pad by 2,
    #      2x2 space-to-depth (pool candidates leading), channels-on-sublane /
    #      flattened-spatial-on-lane.
    xb = x.astype(compute_dtype)
    xp = jnp.pad(xb, ((0, 0), (0, 0), (2, 2), (2, 2)))                  # [n,C,2hq,2wq]
    xq = xp.reshape(n, c_in, hq, 2, wq, 2).transpose(0, 3, 5, 1, 2, 4)  # [n,2,2,C,hq,wq]
    xq = xq.reshape(n, 4, c_in, hq * wq)
    xq = jnp.pad(xq, ((0, 0), (0, 0), (0, 0), (0, flat_len - hq * wq)))

    # ---- fold BatchNorm (running stats) into conv weights / bias ----
    s1 = p["bn1_gamma"] / jnp.sqrt(p["bn1_var"] + eps)
    w1 = (p["w1"] * s1[:, None, None, None]).transpose(2, 3, 0, 1)      # [3,3,C1,Cin]
    w1 = w1.reshape(9, c1, c_in).astype(compute_dtype)
    b1 = ((p["b1"] - p["bn1_mean"]) * s1 + p["bn1_beta"]).reshape(c1, 1)
    s2 = p["bn2_gamma"] / jnp.sqrt(p["bn2_var"] + eps)
    w2 = (p["w2"] * s2[:, None, None, None]).transpose(2, 3, 0, 1)
    w2 = w2.reshape(9, c2, c1).astype(compute_dtype)
    b2 = ((p["b2"] - p["bn2_mean"]) * s2 + p["bn2_beta"]).reshape(c2, 1)

    kernel = functools.partial(_down_kernel, bt=bt, wq=wq, wo=wo, ho=ho, c1=c1, c2=c2)
    out = pl.pallas_call(
        kernel,
        out_shape=jax.ShapeDtypeStruct((n, c2, m_wide), x.dtype),
        grid=(n // bt,),
        in_specs=[
            pl.BlockSpec((bt, 4, c_in, flat_len), lambda i: (i, 0, 0, 0)),
            pl.BlockSpec((9, c1, c_in), lambda i: (0, 0, 0)),
            pl.BlockSpec((c1, 1), lambda i: (0, 0)),
            pl.BlockSpec((9, c2, c1), lambda i: (0, 0, 0)),
            pl.BlockSpec((c2, 1), lambda i: (0, 0)),
        ],
        out_specs=pl.BlockSpec((bt, c2, m_wide), lambda i: (i, 0, 0)),
        scratch_shapes=[pltpu.VMEM((c1, flat_len), compute_dtype)],
        compiler_params=pltpu.CompilerParams(
            dimension_semantics=("parallel",),
            vmem_limit_bytes=48 * 1024 * 1024,   # above v5e's 16 MiB default, below v7x physical
        ),
    )(xq, w1, b1, w2, b2)

    # lane-dense wide slab [N, C2, Ho*Wq] -> NCHW [N, C2, Ho, Wo] (drop garbage cols)
    return out.reshape(n, c2, ho, wq)[:, :, :, :wo]


def down_reference(x, p, *, eps=1e-5):
    """Pure-JAX f32 reference matching PyTorch Down (eval-mode BatchNorm)."""
    n, c, h, w = x.shape
    pooled = x.reshape(n, c, h // 2, 2, w // 2, 2).max(axis=(3, 5))

    def conv_bn_lrelu(z, wgt, b, g, beta, mu, var):
        y = lax.conv_general_dilated(z, wgt, (1, 1), [(1, 1), (1, 1)],
                                     dimension_numbers=('NCHW', 'OIHW', 'NCHW'))
        y = y + b[None, :, None, None]
        y = (g[None, :, None, None] * (y - mu[None, :, None, None])
             / jnp.sqrt(var[None, :, None, None] + eps) + beta[None, :, None, None])
        return jnp.where(y >= 0, y, 0.01 * y)

    a1 = conv_bn_lrelu(pooled, p["w1"], p["b1"], p["bn1_gamma"], p["bn1_beta"],
                       p["bn1_mean"], p["bn1_var"])
    a2 = conv_bn_lrelu(a1, p["w2"], p["b2"], p["bn2_gamma"], p["bn2_beta"],
                       p["bn2_mean"], p["bn2_var"])
    return a2


if __name__ == "__main__":
    key = jax.random.PRNGKey(0)
    ks = jax.random.split(key, 13)

    n, c_in, c_out, h, w = 2, 4, 8, 16, 16
    x = jax.random.normal(ks[0], (n, c_in, h, w), jnp.float32)
    params = {
        "w1": jax.random.normal(ks[1], (c_out, c_in, 3, 3), jnp.float32) * 0.1,
        "b1": jax.random.normal(ks[2], (c_out,), jnp.float32) * 0.1,
        "bn1_gamma": 1.0 + 0.1 * jax.random.normal(ks[3], (c_out,), jnp.float32),
        "bn1_beta": 0.1 * jax.random.normal(ks[4], (c_out,), jnp.float32),
        "bn1_mean": 0.1 * jax.random.normal(ks[5], (c_out,), jnp.float32),
        "bn1_var": 0.5 + jax.random.uniform(ks[6], (c_out,), jnp.float32),
        "w2": jax.random.normal(ks[7], (c_out, c_out, 3, 3), jnp.float32) * 0.1,
        "b2": jax.random.normal(ks[8], (c_out,), jnp.float32) * 0.1,
        "bn2_gamma": 1.0 + 0.1 * jax.random.normal(ks[9], (c_out,), jnp.float32),
        "bn2_beta": 0.1 * jax.random.normal(ks[10], (c_out,), jnp.float32),
        "bn2_mean": 0.1 * jax.random.normal(ks[11], (c_out,), jnp.float32),
        "bn2_var": 0.5 + jax.random.uniform(ks[12], (c_out,), jnp.float32),
    }

    y = down_forward(x, params)
    y = jax.block_until_ready(y)

    y_ref = down_reference(x, params)
    assert y.shape == y_ref.shape == (n, c_out, h // 2, w // 2), (y.shape, y_ref.shape)
    # bf16 operands on the MXU path (per perf review) -> looser tolerance than f32.
    max_err = float(jnp.max(jnp.abs(y - y_ref)))
    assert max_err < 1e-1, f"max abs err {max_err}"
    print("KERNEL_OK")
</pallas_src>

<mosaic_0001>
module attributes {stable_mosaic.version = 11 : i64} {
  func.func @_down_kernel(%arg0: i32, %arg1: memref<1x4x4x102xbf16, #tpu.memory_space<vmem>>, %arg2: memref<9x8x4xbf16, #tpu.memory_space<vmem>>, %arg3: memref<8x1xf32, #tpu.memory_space<vmem>>, %arg4: memref<9x8x8xbf16, #tpu.memory_space<vmem>>, %arg5: memref<8x1xf32, #tpu.memory_space<vmem>>, %arg6: memref<1x8x80xf32, #tpu.memory_space<vmem>>, %arg7: memref<8x102xbf16, #tpu.memory_space<vmem>>) attributes {dimension_semantics = [#tpu.dimension_semantics<parallel>], iteration_bounds = array<i64: 2>, scalar_prefetch = 0 : i64, scratch_operands = 1 : i64, tpu.core_type = #tpu.core_type<tc>, window_params = [{transform_indices = @transform_0, window_bounds = array<i64: 1, 4, 4, 102>}, {pipeline_mode = #tpu.pipeline_mode<synchronous>, transform_indices = @transform_1, window_bounds = array<i64: 9, 8, 4>}, {pipeline_mode = #tpu.pipeline_mode<synchronous>, transform_indices = @transform_2, window_bounds = array<i64: 8, 1>}, {pipeline_mode = #tpu.pipeline_mode<synchronous>, transform_indices = @transform_3, window_bounds = array<i64: 9, 8, 8>}, {pipeline_mode = #tpu.pipeline_mode<synchronous>, transform_indices = @transform_4, window_bounds = array<i64: 8, 1>}, {transform_indices = @transform_5, window_bounds = array<i64: 1, 8, 80>}]} {
    %c0 = arith.constant 0 : index
    %c0_0 = arith.constant 0 : index
    %0 = vector.load %arg3[%c0, %c0_0] : memref<8x1xf32, #tpu.memory_space<vmem>>, vector<8x1xf32>
    %1 = vector.shape_cast %0 : vector<8x1xf32> to vector<8x1xf32>
    %2 = vector.broadcast %1 : vector<8x1xf32> to vector<8x80xf32>
    %c0_1 = arith.constant 0 : index
    %c0_2 = arith.constant 0 : index
    %3 = vector.load %arg5[%c0_1, %c0_2] : memref<8x1xf32, #tpu.memory_space<vmem>>, vector<8x1xf32>
    %4 = vector.shape_cast %3 : vector<8x1xf32> to vector<8x1xf32>
    %5 = vector.broadcast %4 : vector<8x1xf32> to vector<8x80xf32>
    %6 = tpu.iota {dimensions = array<i32: 1>} : vector<8x80xi32>
    %c10_i32 = arith.constant 10 : i32
    %c0_i32 = arith.constant 0 : i32
    %7 = arith.cmpi eq, %c10_i32, %c0_i32 : i32
    %c1_i32 = arith.constant 1 : i32
    %8 = arith.select %7, %c1_i32, %c10_i32 : i32
    %9 = vector.broadcast %8 : i32 to vector<8x80xi32>
    %10 = arith.remsi %6, %9 : vector<8x80xi32>
    %c0_i32_3 = arith.constant 0 : i32
    %11 = vector.broadcast %c0_i32_3 : i32 to vector<8x80xi32>
    %12 = arith.cmpi ne, %10, %11 : vector<8x80xi32>
    %c0_i32_4 = arith.constant 0 : i32
    %13 = vector.broadcast %c0_i32_4 : i32 to vector<8x80xi32>
    %14 = arith.cmpi slt, %10, %13 : vector<8x80xi32>
    %c0_i32_5 = arith.constant 0 : i32
    %15 = arith.cmpi slt, %8, %c0_i32_5 : i32
    %16 = vector.broadcast %15 : i1 to vector<8x80xi1>
    %17 = vector.broadcast %16 : vector<8x80xi1> to vector<8x80xi1>
    %18 = arith.xori %14, %17 : vector<8x80xi1>
    %19 = arith.andi %18, %12 : vector<8x80xi1>
    %20 = vector.broadcast %8 : i32 to vector<8x80xi32>
    %21 = arith.addi %10, %20 : vector<8x80xi32>
    %22 = arith.select %19, %21, %10 : vector<8x80xi1>, vector<8x80xi32>
    %c8_i32 = arith.constant 8 : i32
    %23 = vector.broadcast %c8_i32 : i32 to vector<8x80xi32>
    %24 = arith.cmpi slt, %22, %23 : vector<8x80xi32>
    %25 = arith.extui %24 : vector<8x80xi1> to vector<8x80xi32>
    %26 = arith.sitofp %25 : vector<8x80xi32> to vector<8x80xf32>
    %cst = arith.constant 0.000000e+00 : bf16
    %27 = vector.broadcast %cst : bf16 to vector<8x11xbf16>
    %c0_6 = arith.constant 0 : index
    %c0_7 = arith.constant 0 : index
    %c0_8 = arith.constant 0 : index
    %c0_9 = arith.constant 0 : index
    %28 = vector.load %arg1[%c0_6, %c0_7, %c0_8, %c0_9] : memref<1x4x4x102xbf16, #tpu.memory_space<vmem>>, vector<1x1x4x102xbf16>
    %29 = vector.shape_cast %28 : vector<1x1x4x102xbf16> to vector<4x102xbf16>
    %c0_10 = arith.constant 0 : index
    %c1 = arith.constant 1 : index
    %c0_11 = arith.constant 0 : index
    %c0_12 = arith.constant 0 : index
    %30 = vector.load %arg1[%c0_10, %c1, %c0_11, %c0_12] : memref<1x4x4x102xbf16, #tpu.memory_space<vmem>>, vector<1x1x4x102xbf16>
    %31 = vector.shape_cast %30 : vector<1x1x4x102xbf16> to vector<4x102xbf16>
    %32 = arith.maximumf %29, %31 : vector<4x102xbf16>
    %c0_13 = arith.constant 0 : index
    %c2 = arith.constant 2 : index
    %c0_14 = arith.constant 0 : index
    %c0_15 = arith.constant 0 : index
    %33 = vector.load %arg1[%c0_13, %c2, %c0_14, %c0_15] : memref<1x4x4x102xbf16, #tpu.memory_space<vmem>>, vector<1x1x4x102xbf16>
    %34 = vector.shape_cast %33 : vector<1x1x4x102xbf16> to vector<4x102xbf16>
    %c0_16 = arith.constant 0 : index
    %c3 = arith.constant 3 : index
    %c0_17 = arith.constant 0 : index
    %c0_18 = arith.constant 0 : index
    %35 = vector.load %arg1[%c0_16, %c3, %c0_17, %c0_18] : memref<1x4x4x102xbf16, #tpu.memory_space<vmem>>, vector<1x1x4x102xbf16>
    %36 = vector.shape_cast %35 : vector<1x1x4x102xbf16> to vector<4x102xbf16>
    %37 = arith.maximumf %34, %36 : vector<4x102xbf16>
    %38 = arith.maximumf %32, %37 : vector<4x102xbf16>
    %c0_19 = arith.constant 0 : index
    %c0_20 = arith.constant 0 : index
    %c0_21 = arith.constant 0 : index
    %39 = vector.load %arg2[%c0_19, %c0_20, %c0_21] : memref<9x8x4xbf16, #tpu.memory_space<vmem>>, vector<1x8x4xbf16>
    %40 = vector.shape_cast %39 : vector<1x8x4xbf16> to vector<8x4xbf16>
    %41 = vector.extract_strided_slice %38 {offsets = [0, 0], sizes = [4, 80], strides = [1, 1]} : vector<4x102xbf16> to vector<4x80xbf16>
    %cst_22 = arith.constant dense<0.000000e+00> : vector<8x80xf32>
    %42 = tpu.matmul %40, %41, %cst_22 {dimension_numbers = #tpu.dot_dimension_numbers<[1], [0], [0], [1], [0, 0, 1, 1], [], []>} : vector<8x4xbf16>, vector<4x80xbf16>, vector<8x80xf32> -> vector<8x80xf32>
    %43 = arith.addf %2, %42 : vector<8x80xf32>
    %c1_23 = arith.constant 1 : index
    %c0_24 = arith.constant 0 : index
    %c0_25 = arith.constant 0 : index
    %44 = vector.load %arg2[%c1_23, %c0_24, %c0_25] : memref<9x8x4xbf16, #tpu.memory_space<vmem>>, vector<1x8x4xbf16>
    %45 = vector.shape_cast %44 : vector<1x8x4xbf16> to vector<8x4xbf16>
    %46 = vector.extract_strided_slice %38 {offsets = [0, 1], sizes = [4, 80], strides = [1, 1]} : vector<4x102xbf16> to vector<4x80xbf16>
    %cst_26 = arith.constant dense<0.000000e+00> : vector<8x80xf32>
    %47 = tpu.matmul %45, %46, %cst_26 {dimension_numbers = #tpu.dot_dimension_numbers<[1], [0], [0], [1], [0, 0, 1, 1], [], []>} : vector<8x4xbf16>, vector<4x80xbf16>, vector<8x80xf32> -> vector<8x80xf32>
    %48 = arith.addf %43, %47 : vector<8x80xf32>
    %c2_27 = arith.constant 2 : index
    %c0_28 = arith.constant 0 : index
    %c0_29 = arith.constant 0 : index
    %49 = vector.load %arg2[%c2_27, %c0_28, %c0_29] : memref<9x8x4xbf16, #tpu.memory_space<vmem>>, vector<1x8x4xbf16>
    %50 = vector.shape_cast %49 : vector<1x8x4xbf16> to vector<8x4xbf16>
    %51 = vector.extract_strided_slice %38 {offsets = [0, 2], sizes = [4, 80], strides = [1, 1]} : vector<4x102xbf16> to vector<4x80xbf16>
    %cst_30 = arith.constant dense<0.000000e+00> : vector<8x80xf32>
    %52 = tpu.matmul %50, %51, %cst_30 {dimension_numbers = #tpu.dot_dimension_numbers<[1], [0], [0], [1], [0, 0, 1, 1], [], []>} : vector<8x4xbf16>, vector<4x80xbf16>, vector<8x80xf32> -> vector<8x80xf32>
    %53 = arith.addf %48, %52 : vector<8x80xf32>
    %c3_31 = arith.constant 3 : index
    %c0_32 = arith.constant 0 : index
    %c0_33 = arith.constant 0 : index
    %54 = vector.load %arg2[%c3_31, %c0_32, %c0_33] : memref<9x8x4xbf16, #tpu.memory_space<vmem>>, vector<1x8x4xbf16>
    %55 = vector.shape_cast %54 : vector<1x8x4xbf16> to vector<8x4xbf16>
    %56 = vector.extract_strided_slice %38 {offsets = [0, 10], sizes = [4, 80], strides = [1, 1]} : vector<4x102xbf16> to vector<4x80xbf16>
    %cst_34 = arith.constant dense<0.000000e+00> : vector<8x80xf32>
    %57 = tpu.matmul %55, %56, %cst_34 {dimension_numbers = #tpu.dot_dimension_numbers<[1], [0], [0], [1], [0, 0, 1, 1], [], []>} : vector<8x4xbf16>, vector<4x80xbf16>, vector<8x80xf32> -> vector<8x80xf32>
    %58 = arith.addf %53, %57 : vector<8x80xf32>
    %c4 = arith.constant 4 : index
    %c0_35 = arith.constant 0 : index
    %c0_36 = arith.constant 0 : index
    %59 = vector.load %arg2[%c4, %c0_35, %c0_36] : memref<9x8x4xbf16, #tpu.memory_space<vmem>>, vector<1x8x4xbf16>
    %60 = vector.shape_cast %59 : vector<1x8x4xbf16> to vector<8x4xbf16>
    %61 = vector.extract_strided_slice %38 {offsets = [0, 11], sizes = [4, 80], strides = [1, 1]} : vector<4x102xbf16> to vector<4x80xbf16>
    %cst_37 = arith.constant dense<0.000000e+00> : vector<8x80xf32>
    %62 = tpu.matmul %60, %61, %cst_37 {dimension_numbers = #tpu.dot_dimension_numbers<[1], [0], [0], [1], [0, 0, 1, 1], [], []>} : vector<8x4xbf16>, vector<4x80xbf16>, vector<8x80xf32> -> vector<8x80xf32>
    %63 = arith.addf %58, %62 : vector<8x80xf32>
    %c5 = arith.constant 5 : index
    %c0_38 = arith.constant 0 : index
    %c0_39 = arith.constant 0 : index
    %64 = vector.load %arg2[%c5, %c0_38, %c0_39] : memref<9x8x4xbf16, #tpu.memory_space<vmem>>, vector<1x8x4xbf16>
    %65 = vector.shape_cast %64 : vector<1x8x4xbf16> to vector<8x4xbf16>
    %66 = vector.extract_strided_slice %38 {offsets = [0, 12], sizes = [4, 80], strides = [1, 1]} : vector<4x102xbf16> to vector<4x80xbf16>
    %cst_40 = arith.constant dense<0.000000e+00> : vector<8x80xf32>
    %67 = tpu.matmul %65, %66, %cst_40 {dimension_numbers = #tpu.dot_dimension_numbers<[1], [0], [0], [1], [0, 0, 1, 1], [], []>} : vector<8x4xbf16>, vector<4x80xbf16>, vector<8x80xf32> -> vector<8x80xf32>
    %68 = arith.addf %63, %67 : vector<8x80xf32>
    %c6 = arith.constant 6 : index
    %c0_41 = arith.constant 0 : index
    %c0_42 = arith.constant 0 : index
    %69 = vector.load %arg2[%c6, %c0_41, %c0_42] : memref<9x8x4xbf16, #tpu.memory_space<vmem>>, vector<1x8x4xbf16>
    %70 = vector.shape_cast %69 : vector<1x8x4xbf16> to vector<8x4xbf16>
    %71 = vector.extract_strided_slice %38 {offsets = [0, 20], sizes = [4, 80], strides = [1, 1]} : vector<4x102xbf16> to vector<4x80xbf16>
    %cst_43 = arith.constant dense<0.000000e+00> : vector<8x80xf32>
    %72 = tpu.matmul %70, %71, %cst_43 {dimension_numbers = #tpu.dot_dimension_numbers<[1], [0], [0], [1], [0, 0, 1, 1], [], []>} : vector<8x4xbf16>, vector<4x80xbf16>, vector<8x80xf32> -> vector<8x80xf32>
    %73 = arith.addf %68, %72 : vector<8x80xf32>
    %c7 = arith.constant 7 : index
    %c0_44 = arith.constant 0 : index
    %c0_45 = arith.constant 0 : index
    %74 = vector.load %arg2[%c7, %c0_44, %c0_45] : memref<9x8x4xbf16, #tpu.memory_space<vmem>>, vector<1x8x4xbf16>
    %75 = vector.shape_cast %74 : vector<1x8x4xbf16> to vector<8x4xbf16>
    %76 = vector.extract_strided_slice %38 {offsets = [0, 21], sizes = [4, 80], strides = [1, 1]} : vector<4x102xbf16> to vector<4x80xbf16>
    %cst_46 = arith.constant dense<0.000000e+00> : vector<8x80xf32>
    %77 = tpu.matmul %75, %76, %cst_46 {dimension_numbers = #tpu.dot_dimension_numbers<[1], [0], [0], [1], [0, 0, 1, 1], [], []>} : vector<8x4xbf16>, vector<4x80xbf16>, vector<8x80xf32> -> vector<8x80xf32>
    %78 = arith.addf %73, %77 : vector<8x80xf32>
    %c8 = arith.constant 8 : index
    %c0_47 = arith.constant 0 : index
    %c0_48 = arith.constant 0 : index
    %79 = vector.load %arg2[%c8, %c0_47, %c0_48] : memref<9x8x4xbf16, #tpu.memory_space<vmem>>, vector<1x8x4xbf16>
    %80 = vector.shape_cast %79 : vector<1x8x4xbf16> to vector<8x4xbf16>
    %81 = vector.extract_strided_slice %38 {offsets = [0, 22], sizes = [4, 80], strides = [1, 1]} : vector<4x102xbf16> to vector<4x80xbf16>
    %cst_49 = arith.constant dense<0.000000e+00> : vector<8x80xf32>
    %82 = tpu.matmul %80, %81, %cst_49 {dimension_numbers = #tpu.dot_dimension_numbers<[1], [0], [0], [1], [0, 0, 1, 1], [], []>} : vector<8x4xbf16>, vector<4x80xbf16>, vector<8x80xf32> -> vector<8x80xf32>
    %83 = arith.addf %78, %82 : vector<8x80xf32>
    %cst_50 = arith.constant 0.00999999977 : f32
    %84 = vector.broadcast %cst_50 : f32 to vector<8x80xf32>
    %85 = arith.mulf %84, %83 : vector<8x80xf32>
    %86 = arith.maximumf %83, %85 : vector<8x80xf32>
    %87 = arith.mulf %86, %26 : vector<8x80xf32>
    %c0_51 = arith.constant 0 : index
    %c0_52 = arith.constant 0 : index
    %88 = vector.load %arg7[%c0_51, %c0_52] : memref<8x102xbf16, #tpu.memory_space<vmem>>, vector<8x11xbf16>
    tpu.vector_store %arg7[%c0_51, %c0_52], %27 {strides = array<i32>} : memref<8x102xbf16, #tpu.memory_space<vmem>>, vector<8x11xbf16>,
    %89 = arith.truncf %87 : vector<8x80xf32> to vector<8x80xbf16>
    %c0_53 = arith.constant 0 : index
    %c11 = arith.constant 11 : index
    %90 = vector.load %arg7[%c0_53, %c11] : memref<8x102xbf16, #tpu.memory_space<vmem>>, vector<8x80xbf16>
    tpu.vector_store %arg7[%c0_53, %c11], %89 {strides = array<i32>} : memref<8x102xbf16, #tpu.memory_space<vmem>>, vector<8x80xbf16>,
    %c0_54 = arith.constant 0 : index
    %c91 = arith.constant 91 : index
    %91 = vector.load %arg7[%c0_54, %c91] : memref<8x102xbf16, #tpu.memory_space<vmem>>, vector<8x11xbf16>
    tpu.vector_store %arg7[%c0_54, %c91], %27 {strides = array<i32>} : memref<8x102xbf16, #tpu.memory_space<vmem>>, vector<8x11xbf16>,
    %c0_55 = arith.constant 0 : index
    %c0_56 = arith.constant 0 : index
    %92 = vector.load %arg7[%c0_55, %c0_56] : memref<8x102xbf16, #tpu.memory_space<vmem>>, vector<8x102xbf16>
    %c0_57 = arith.constant 0 : index
    %c0_58 = arith.constant 0 : index
    %c0_59 = arith.constant 0 : index
    %93 = vector.load %arg4[%c0_57, %c0_58, %c0_59] : memref<9x8x8xbf16, #tpu.memory_space<vmem>>, vector<1x8x8xbf16>
    %94 = vector.shape_cast %93 : vector<1x8x8xbf16> to vector<8x8xbf16>
    %95 = vector.extract_strided_slice %92 {offsets = [0, 0], sizes = [8, 80], strides = [1, 1]} : vector<8x102xbf16> to vector<8x80xbf16>
    %cst_60 = arith.constant dense<0.000000e+00> : vector<8x80xf32>
    %96 = tpu.matmul %94, %95, %cst_60 {dimension_numbers = #tpu.dot_dimension_numbers<[1], [0], [0], [1], [0, 0, 1, 1], [], []>} : vector<8x8xbf16>, vector<8x80xbf16>, vector<8x80xf32> -> vector<8x80xf32>
    %97 = arith.addf %5, %96 : vector<8x80xf32>
    %c1_61 = arith.constant 1 : index
    %c0_62 = arith.constant 0 : index
    %c0_63 = arith.constant 0 : index
    %98 = vector.load %arg4[%c1_61, %c0_62, %c0_63] : memref<9x8x8xbf16, #tpu.memory_space<vmem>>, vector<1x8x8xbf16>
    %99 = vector.shape_cast %98 : vector<1x8x8xbf16> to vector<8x8xbf16>
    %100 = vector.extract_strided_slice %92 {offsets = [0, 1], sizes = [8, 80], strides = [1, 1]} : vector<8x102xbf16> to vector<8x80xbf16>
    %cst_64 = arith.constant dense<0.000000e+00> : vector<8x80xf32>
    %101 = tpu.matmul %99, %100, %cst_64 {dimension_numbers = #tpu.dot_dimension_numbers<[1], [0], [0], [1], [0, 0, 1, 1], [], []>} : vector<8x8xbf16>, vector<8x80xbf16>, vector<8x80xf32> -> vector<8x80xf32>
    %102 = arith.addf %97, %101 : vector<8x80xf32>
    %c2_65 = arith.constant 2 : index
    %c0_66 = arith.constant 0 : index
    %c0_67 = arith.constant 0 : index
    %103 = vector.load %arg4[%c2_65, %c0_66, %c0_67] : memref<9x8x8xbf16, #tpu.memory_space<vmem>>, vector<1x8x8xbf16>
    %104 = vector.shape_cast %103 : vector<1x8x8xbf16> to vector<8x8xbf16>
    %105 = vector.extract_strided_slice %92 {offsets = [0, 2], sizes = [8, 80], strides = [1, 1]} : vector<8x102xbf16> to vector<8x80xbf16>
    %cst_68 = arith.constant dense<0.000000e+00> : vector<8x80xf32>
    %106 = tpu.matmul %104, %105, %cst_68 {dimension_numbers = #tpu.dot_dimension_numbers<[1], [0], [0], [1], [0, 0, 1, 1], [], []>} : vector<8x8xbf16>, vector<8x80xbf16>, vector<8x80xf32> -> vector<8x80xf32>
    %107 = arith.addf %102, %106 : vector<8x80xf32>
    %c3_69 = arith.constant 3 : index
    %c0_70 = arith.constant 0 : index
    %c0_71 = arith.constant 0 : index
    %108 = vector.load %arg4[%c3_69, %c0_70, %c0_71] : memref<9x8x8xbf16, #tpu.memory_space<vmem>>, vector<1x8x8xbf16>
    %109 = vector.shape_cast %108 : vector<1x8x8xbf16> to vector<8x8xbf16>
    %110 = vector.extract_strided_slice %92 {offsets = [0, 10], sizes = [8, 80], strides = [1, 1]} : vector<8x102xbf16> to vector<8x80xbf16>
    %cst_72 = arith.constant dense<0.000000e+00> : vector<8x80xf32>
    %111 = tpu.matmul %109, %110, %cst_72 {dimension_numbers = #tpu.dot_dimension_numbers<[1], [0], [0], [1], [0, 0, 1, 1], [], []>} : vector<8x8xbf16>, vector<8x80xbf16>, vector<8x80xf32> -> vector<8x80xf32>
    %112 = arith.addf %107, %111 : vector<8x80xf32>
    %c4_73 = arith.constant 4 : index
    %c0_74 = arith.constant 0 : index
    %c0_75 = arith.constant 0 : index
    %113 = vector.load %arg4[%c4_73, %c0_74, %c0_75] : memref<9x8x8xbf16, #tpu.memory_space<vmem>>, vector<1x8x8xbf16>
    %114 = vector.shape_cast %113 : vector<1x8x8xbf16> to vector<8x8xbf16>
    %115 = vector.extract_strided_slice %92 {offsets = [0, 11], sizes = [8, 80], strides = [1, 1]} : vector<8x102xbf16> to vector<8x80xbf16>
    %cst_76 = arith.constant dense<0.000000e+00> : vector<8x80xf32>
    %116 = tpu.matmul %114, %115, %cst_76 {dimension_numbers = #tpu.dot_dimension_numbers<[1], [0], [0], [1], [0, 0, 1, 1], [], []>} : vector<8x8xbf16>, vector<8x80xbf16>, vector<8x80xf32> -> vector<8x80xf32>
    %117 = arith.addf %112, %116 : vector<8x80xf32>
    %c5_77 = arith.constant 5 : index
    %c0_78 = arith.constant 0 : index
    %c0_79 = arith.constant 0 : index
    %118 = vector.load %arg4[%c5_77, %c0_78, %c0_79] : memref<9x8x8xbf16, #tpu.memory_space<vmem>>, vector<1x8x8xbf16>
    %119 = vector.shape_cast %118 : vector<1x8x8xbf16> to vector<8x8xbf16>
    %120 = vector.extract_strided_slice %92 {offsets = [0, 12], sizes = [8, 80], strides = [1, 1]} : vector<8x102xbf16> to vector<8x80xbf16>
    %cst_80 = arith.constant dense<0.000000e+00> : vector<8x80xf32>
    %121 = tpu.matmul %119, %120, %cst_80 {dimension_numbers = #tpu.dot_dimension_numbers<[1], [0], [0], [1], [0, 0, 1, 1], [], []>} : vector<8x8xbf16>, vector<8x80xbf16>, vector<8x80xf32> -> vector<8x80xf32>
    %122 = arith.addf %117, %121 : vector<8x80xf32>
    %c6_81 = arith.constant 6 : index
    %c0_82 = arith.constant 0 : index
    %c0_83 = arith.constant 0 : index
    %123 = vector.load %arg4[%c6_81, %c0_82, %c0_83] : memref<9x8x8xbf16, #tpu.memory_space<vmem>>, vector<1x8x8xbf16>
    %124 = vector.shape_cast %123 : vector<1x8x8xbf16> to vector<8x8xbf16>
    %125 = vector.extract_strided_slice %92 {offsets = [0, 20], sizes = [8, 80], strides = [1, 1]} : vector<8x102xbf16> to vector<8x80xbf16>
    %cst_84 = arith.constant dense<0.000000e+00> : vector<8x80xf32>
    %126 = tpu.matmul %124, %125, %cst_84 {dimension_numbers = #tpu.dot_dimension_numbers<[1], [0], [0], [1], [0, 0, 1, 1], [], []>} : vector<8x8xbf16>, vector<8x80xbf16>, vector<8x80xf32> -> vector<8x80xf32>
    %127 = arith.addf %122, %126 : vector<8x80xf32>
    %c7_85 = arith.constant 7 : index
    %c0_86 = arith.constant 0 : index
    %c0_87 = arith.constant 0 : index
    %128 = vector.load %arg4[%c7_85, %c0_86, %c0_87] : memref<9x8x8xbf16, #tpu.memory_space<vmem>>, vector<1x8x8xbf16>
    %129 = vector.shape_cast %128 : vector<1x8x8xbf16> to vector<8x8xbf16>
    %130 = vector.extract_strided_slice %92 {offsets = [0, 21], sizes = [8, 80], strides = [1, 1]} : vector<8x102xbf16> to vector<8x80xbf16>
    %cst_88 = arith.constant dense<0.000000e+00> : vector<8x80xf32>
    %131 = tpu.matmul %129, %130, %cst_88 {dimension_numbers = #tpu.dot_dimension_numbers<[1], [0], [0], [1], [0, 0, 1, 1], [], []>} : vector<8x8xbf16>, vector<8x80xbf16>, vector<8x80xf32> -> vector<8x80xf32>
    %132 = arith.addf %127, %131 : vector<8x80xf32>
    %c8_89 = arith.constant 8 : index
    %c0_90 = arith.constant 0 : index
    %c0_91 = arith.constant 0 : index
    %133 = vector.load %arg4[%c8_89, %c0_90, %c0_91] : memref<9x8x8xbf16, #tpu.memory_space<vmem>>, vector<1x8x8xbf16>
    %134 = vector.shape_cast %133 : vector<1x8x8xbf16> to vector<8x8xbf16>
    %135 = vector.extract_strided_slice %92 {offsets = [0, 22], sizes = [8, 80], strides = [1, 1]} : vector<8x102xbf16> to vector<8x80xbf16>
    %cst_92 = arith.constant dense<0.000000e+00> : vector<8x80xf32>
    %136 = tpu.matmul %134, %135, %cst_92 {dimension_numbers = #tpu.dot_dimension_numbers<[1], [0], [0], [1], [0, 0, 1, 1], [], []>} : vector<8x8xbf16>, vector<8x80xbf16>, vector<8x80xf32> -> vector<8x80xf32>
    %137 = arith.addf %132, %136 : vector<8x80xf32>
    %cst_93 = arith.constant 0.00999999977 : f32
    %138 = vector.broadcast %cst_93 : f32 to vector<8x80xf32>
    %139 = arith.mulf %138, %137 : vector<8x80xf32>
    %140 = arith.maximumf %137, %139 : vector<8x80xf32>
    %c0_94 = arith.constant 0 : index
    %c0_95 = arith.constant 0 : index
    %c0_96 = arith.constant 0 : index
    %141 = vector.load %arg6[%c0_94, %c0_95, %c0_96] : memref<1x8x80xf32, #tpu.memory_space<vmem>>, vector<1x8x80xf32>
    %142 = vector.shape_cast %141 : vector<1x8x80xf32> to vector<8x80xf32>
    %143 = vector.shape_cast %140 : vector<8x80xf32> to vector<1x8x80xf32>
    tpu.vector_store %arg6[%c0_94, %c0_95, %c0_96], %143 {strides = array<i32>} : memref<1x8x80xf32, #tpu.memory_space<vmem>>, vector<1x8x80xf32>,
    return
  }
  func.func @transform_0(%arg0: i32) -> (i32, i32, i32, i32) {
    %c0_i32 = arith.constant 0 : i32
    %c0_i32_0 = arith.constant 0 : i32
    %c0_i32_1 = arith.constant 0 : i32
    %c0_i32_2 = arith.constant 0 : i32
    return %arg0, %c0_i32, %c0_i32_0, %c0_i32_1 : i32, i32, i32, i32
  }
  func.func @transform_1(%arg0: i32) -> (i32, i32, i32) {
    %c0_i32 = arith.constant 0 : i32
    %c0_i32_0 = arith.constant 0 : i32
    %c0_i32_1 = arith.constant 0 : i32
    %c0_i32_2 = arith.constant 0 : i32
    return %c0_i32, %c0_i32_0, %c0_i32_1 : i32, i32, i32
  }
  func.func @transform_2(%arg0: i32) -> (i32, i32) {
    %c0_i32 = arith.constant 0 : i32
    %c0_i32_0 = arith.constant 0 : i32
    %c0_i32_1 = arith.constant 0 : i32
    return %c0_i32, %c0_i32_0 : i32, i32
  }
  func.func @transform_3(%arg0: i32) -> (i32, i32, i32) {
    %c0_i32 = arith.constant 0 : i32
    %c0_i32_0 = arith.constant 0 : i32
    %c0_i32_1 = arith.constant 0 : i32
    %c0_i32_2 = arith.constant 0 : i32
    return %c0_i32, %c0_i32_0, %c0_i32_1 : i32, i32, i32
  }
  func.func @transform_4(%arg0: i32) -> (i32, i32) {
    %c0_i32 = arith.constant 0 : i32
    %c0_i32_0 = arith.constant 0 : i32
    %c0_i32_1 = arith.constant 0 : i32
    return %c0_i32, %c0_i32_0 : i32, i32
  }
  func.func @transform_5(%arg0: i32) -> (i32, i32, i32) {
    %c0_i32 = arith.constant 0 : i32
    %c0_i32_0 = arith.constant 0 : i32
    %c0_i32_1 = arith.constant 0 : i32
    return %arg0, %c0_i32, %c0_i32_0 : i32, i32, i32
  }
}

</mosaic_0001>

<bundles_post_ra>
// kernel: tpu_custom_call.1
= control target key start
LH: loop header
LB: loop body
LE: loop exit
PB: predicated region body
PF: predicated region fallthrough
CT: control target
= control target key end

     0   :  { %10 = vsyncpa [#allocation4], 0  ;;  %s1234_s0 = inlined_call_operand.vmem [shape: bf16[2,4,4,102], index: 0, kind: input, shape index: {}]   ;;  %s1235_s1 = inlined_call_operand.vmem [shape: bf16[9,8,4], index: 1, kind: input, shape index: {}]   ;;  %s1236_s2 = inlined_call_operand.vmem [shape: f32[8,1], index: 2, kind: input, shape index: {}]   ;;  %s1237_s3 = inlined_call_operand.vmem [shape: bf16[9,8,8], index: 3, kind: input, shape index: {}]   ;;  %s1238_s4 = inlined_call_operand.vmem [shape: f32[8,1], index: 4, kind: input, shape index: {}]   ;;  %s1239_s5 = inlined_call_operand.hbm [shape: f32[2,8,80], index: 5, kind: output, shape index: {}]  }
   0x1   :  { %12 = vsyncpa [#allocation4 + $0x1], 0  ;;  %s1031_s18 = smov 0   ;;  %s1033_s19 = smov 0  }
   0x2   :  { %s1035_s20 = smov 0   ;;  %s1037_s21 = smov 0  }
   0x3 LB: > { %s1052_s22 = sadd.s32 4294967295, %s988_s21   ;;  %s824_s23 = sadd.s32 4294967294, %s988_s21   ;;  %s988_s21 = sphi %s1037_s21, %s1245_s21   ;;  %s984_s20 = sphi %s1035_s20, %s1244_s20   ;;  %s980_s19 = sphi %s1033_s19, %s1243_s19   ;;  %s976_s18 = sphi %s1031_s18, %s1242_s18  }
   0x4   : > { %s1056_s24 = sadd.s32 1, %s988_s21   ;;  %s135_s25 = sadd.s32 1, %s984_s20 }
   0x5   : > { %s132_s26 = ssub.s32 %s988_s21, %s1056_s24  ;;  %p145_p0 = scmp.ne.s32.totalorder %s984_s20, %s980_s19 }
   0x6   : > { %p133_p1 = scmp.eq.s32.totalorder %s132_s26, 0  ;;  %p146_p2 = scmp.eq.s32.totalorder %s1052_s22, 1 }
   0x7   : > { %p151_p3 = scmp.ne.s32.totalorder %s980_s19, %s976_s18  ;;  %p152_p4 = scmp.eq.s32.totalorder %s824_s23, 1 }
   0x8   : > { %s1067_s27 = scalar_select %p133_p1, %s984_s20, %s135_s25  }
   0x9   : > { %p1069_p5 = por %p146_p2, %p145_p0  ;;  %p1073_p6 = por %p152_p4, %p151_p3 }
   0xa   : > { %p827_p7 = scmp.ge.s32.totalorder %s988_s21, 1  ;;  %p190_p8 = scmp.lt.s32.totalorder %s988_s21, 3 }
   0xc   : > { %p191_p9 = pnand %p827_p7, %p190_p8 }
   0xd   : > { %p218_p10 = scmp.lt.s32.totalorder (!%p191_p9), %s1052_s22, 1  ;;  %s990_s12 = smov (!%p191_p9), 127  }
   0xe   : > { %194 = sbr.rel (%p191_p9) target bundleno = 734 (0x2de), region = 40  ;;  %s991_s13 = smov (!%p191_p9), 126  }
   0xf   : > { %s992_s14 = smov (!%p191_p9), 108   ;;  %s993_s15 = smov (!%p191_p9), 117  }
  0x10   : > { %s994_s16 = smov (!%p191_p9), 118   ;;  %s995_s17 = smov (!%p191_p9), 107  }
  0x11   : > { %s996_s23 = smov (!%p191_p9), 116   ;;  %s997_s25 = smov (!%p191_p9), 106  }
  0x12   : > { %s946_s8 = scalar_lea.hbm (!%p191_p9), %s1239_s5, 16 }
  0x13   : > { %s219_s30 = scalar_select %p218_p10, %s1052_s22, 1  ;;  %vm299_vm0 = vcmask 1041408   ;;  %v294_v15 = vld [vmem:[%s1235_s1] sm:$0xf]  ;;  %vm295_vm1 = vcmask 31744   ;;  %v998_v18 = vmov 0   ;;  %v236_v44 = vlaneseq }
  0x14   : > { %v224_v17 = vld [vmem:[%s1236_s2] sm:$0xff]  ;;  %924 = vset.pattern.permute.xlu2 %v998_v18  ;;  %925 = vset.pattern.permute.xlu0 %v998_v18  ;;  %v838_v24 = vld [vmem:[%s1235_s1 + $0x8] sm:$0xf]  ;;  %v840_v32 = vld [vmem:[%s1235_s1 + $0xc] sm:$0xf]  ;;  %vm515_vm4 = vcmask 84992  }
  0x15   : > { %s873_s6 = sshll.u32 %s219_s30, 3  ;;  %v836_v25 = vld [vmem:[%s1235_s1 + $0x4] sm:$0xf]  ;;  %v842_v33 = vld [vmem:[%s1235_s1 + $0x10] sm:$0xf]  ;;  %v237_v45 = vand.u32 127, %v236_v44 }
  0x16   : > { %s222_s9 = scalar_lea.vmem %s1234_s0, %s873_s6  ;;  %v846_v39 = vld [vmem:[%s1235_s1 + $0x18] sm:$0xf]  ;;  %v844_v40 = vld [vmem:[%s1235_s1 + $0x14] sm:$0xf]  ;;  %v848_v42 = vld [vmem:[%s1235_s1 + $0x1c] sm:$0xf] }
  0x17   : > { %v275_v0 = vld [vmem:[%s222_s9] sm:$0x3]  ;;  %v832_v1 = vld [vmem:[%s222_s9 + $0x2] sm:$0x3]  ;;  %v833_v2 = vld [vmem:[%s222_s9 + $0x4] sm:$0x3] }
  0x18   : > { %v278_v3 = vunpack.c.l.bf16 %v275_v0  ;;  %v279_v4 = vunpack.c.l.bf16 %v832_v1  ;;  %v834_v5 = vld [vmem:[%s222_s9 + $0x6] sm:$0x3]  ;;  %v286_v6 = vunpack.c.l.bf16 %v833_v2  ;;  %v850_v43 = vld [vmem:[%s1235_s1 + $0x20] sm:$0xf]  ;;  %v241_v46 = vand.u32 65535, %v237_v45  ;;  %s1000_s6 = smov 11  }
  0x19   : > { %v287_v7 = vunpack.c.l.bf16 %v834_v5  ;;  %v242_v47 = vshrl.u32 %v237_v45, 16  ;;  %516 = vst.msk [vmem:[#allocation2] sm:$0xf] %vm515_vm4, %v998_v18  ;;  %vm522_vm9 = vcmask 740440   ;;  %vm524_vm10 = vcmask 831192  }
  0x1a   : > { %v280_v8 = vmax.f32 %v278_v3, %v279_v4  ;;  %v245_v48 = vmul.u32 52428, %v241_v46  ;;  %v244_v49 = vmul.u32 52429, %v241_v46  ;;  %vm532_vm11 = vcmask 1043456   ;;  %v855_v44 = vld [vmem:[%s1237_s3 + $0x8] sm:$0xf] }
  0x1b   : > { %v288_v9 = vmax.f32 %v286_v6, %v287_v7  ;;  %v246_v50 = vmul.u32 52429, %v242_v47  ;;  %v247_v54 = vmul.u32 52428, %v242_v47  ;;  %vm528_vm12 = vcmask 64512  }
  0x1c   : > { %v248_v51 = vshll.u32 %v245_v48, 16  ;;  %v249_v60 = vshrl.u32 %v245_v48, 16  ;;  %vm747_vm13 = vcmask 654336  }
  0x1d   : > { %v292_v10 = vmax.f32 %v280_v8, %v288_v9  ;;  %v250_v52 = vshll.u32 %v246_v50, 16  ;;  %v251_v61 = vshrl.u32 %v246_v50, 16 }
  0x1e   : > { %vm252_vm2 = vc.u32 %v244_v49, %v248_v51  ;;  %v254_v53 = vadd.s32 %v248_v51, %v244_v49 }
  0x1f   : > { %v293_v11 = vpack.c.bf16 %v292_v10, %v292_v10  ;;  %v253_v55 = vsel %vm252_vm2, 1, %v998_v18 }
  0x20   : > { %vm256_vm3 = vc.u32 %v254_v53, %v250_v52  ;;  %v255_v56 = vadd.s32 %v253_v55, %v247_v54  ;;  %v853_v52 = vld [vmem:[%s1237_s3 + $0x4] sm:$0xf]  ;;  %v857_v53 = vld [vmem:[%s1237_s3 + $0xc] sm:$0xf] }
  0x21   : > { %v320_v12 = vunpack.c.l.b16 %v293_v11  ;;  %v301_v13 = vsel %vm299_vm0, %v293_v11, 0  ;;  %v257_v57 = vsel %vm256_vm3, 1, %v998_v18 }
  0x22   : > { %310 = vmatpush.bf16.msra.mxu0 %v301_v13  ;;  %v259_v58 = vadd.s32 %v257_v57, %v255_v56 }
  0x23   : > { %v321_v14 = vpack.c.b16 %v320_v12, %v320_v12 }
  0x24   : > { %v260_v62 = vadd.s32 %v259_v58, %v249_v60  ;;  %v859_v60 = vld [vmem:[%s1237_s3 + $0x10] sm:$0xf] }
  0x25   : > { %322 = vrot.lane.b32.xlu1 %v321_v14, %s990_s12  ;;  %346 = vrot.lane.b32.xlu0 %v321_v14, %s991_s13 }
  0x26   : > { %442 = vrot.lane.b32.xlu2 %v321_v14, %s992_s14  ;;  %835 = vmatmul.msk.bf16.vlgmr.msra.gmra.mxu0 %vm295_vm1, %v294_v15  ;;  %v261_v3 = vadd.s32 %v260_v62, %v251_v61  ;;  %v863_v61 = vld [vmem:[%s1237_s3 + $0x18] sm:$0xf] }
  0x28   : > { %v262_v5 = vshrl.u32 %v261_v3, 3 }
  0x2a   : > { %v263_v11 = vmul.u32 10, %v262_v5 }
  0x2d   : > { %394 = vrot.lane.b32.xlu1 %v321_v14, %s993_s15  ;;  %370 = vrot.lane.b32.xlu0 %v321_v14, %s994_s16 }
  0x2e   : > { %466 = vrot.lane.b32.xlu2 %v321_v14, %s995_s17 }
  0x35   : > { %418 = vrot.lane.b32.xlu0 %v321_v14, %s996_s23  ;;  %490 = vrot.lane.b32.xlu1 %v321_v14, %s997_s25  ;;  %v264_v14 = vsub.s32 %v237_v45, %v263_v11  ;;  %v230_v45 = vld [vmem:[%s1238_s4] sm:$0xff] }
  0x36   : > { %227 = vperm.xlu2 %924, %v224_v17  }
  0x37   : > { %vm267_vm5 = vcmp.ne.s32.totalorder %v264_v14, 0  ;;  %vm268_vm6 = vcmp.lt.s32.totalorder %v264_v14, 0 }
  0x38   : > { %vm269_vm7 = vmand %vm268_vm6, %vm267_vm5 }
  0x80   : > { %v443_v16 = vpop.permute.xlu2 %442 }
  0x81   : > { %v448_v21 = vsel %vm299_vm0, %v443_v16, 0 }
  0x88   : > { %v467_v26 = vpop.permute.xlu2 %466 }
  0x89   : > { %v472_v29 = vsel %vm299_vm0, %v467_v26, 0 }
  0x90   : > { %v228_v0 = vpop.permute.xlu2 %227 }
  0x97   : > { %v323_v19 = vpop.permute.xlu1 %322  ;;  %v347_v20 = vpop.permute.xlu0 %346 }
  0x98   : > { %v352_v22 = vsel %vm299_vm0, %v347_v20, 0  ;;  %v328_v23 = vsel %vm299_vm0, %v323_v19, 0 }
  0x99   : > { %361 = vmatpush.bf16.msra.mxu2 %v352_v22  ;;  %337 = vmatpush.bf16.msra.mxu1 %v328_v23 }
  0x9c   : > { %839 = vmatmul.msk.bf16.vlgmr.msra.gmra.mxu2 %vm295_vm1, %v838_v24  ;;  %837 = vmatmul.msk.bf16.vlgmr.msra.gmra.mxu1 %vm295_vm1, %v836_v25 }
  0x9d   : > { %457 = vmatpush.bf16.msrb.mxu2 %v448_v21  ;;  %v270_v21 = vadd.s32 10, %v264_v14 }
  0x9f   : > { %v395_v27 = vpop.permute.xlu1 %394  ;;  %v371_v28 = vpop.permute.xlu0 %370  ;;  %v271_v26 = vsel %vm269_vm7, %v270_v21, %v264_v14 }
  0xa0   : > { %v376_v30 = vsel %vm299_vm0, %v371_v28, 0  ;;  %v400_v31 = vsel %vm299_vm0, %v395_v27, 0  ;;  %vm272_vm8 = vcmp.lt.s32.totalorder %v271_v26, 8 }
  0xa1   : > { %385 = vmatpush.bf16.msra.mxu3 %v376_v30  ;;  %409 = vmatpush.bf16.msrb.mxu0 %v400_v31  ;;  %v999_v31 = vmov 0.0  }
  0xa3   : > { %v312_v34 = vpop.f32.mrf.mxu0 }
  0xa4   : > { %841 = vmatmul.msk.bf16.vlgmr.msra.gmra.mxu3 %vm295_vm1, %v840_v32  ;;  %843 = vmatmul.msk.bf16.vlgmr.msrb.gmra.mxu0 %vm295_vm1, %v842_v33  ;;  %v316_v4 = vadd.f32 %v312_v34, %v228_v0  ;;  %v831_v32 = vsel %vm272_vm8, 1.0, %v999_v31  ;;  %v861_v0 = vld [vmem:[%s1237_s3 + $0x14] sm:$0xf] }
  0xa5   : > { %481 = vmatpush.bf16.msrb.mxu3 %v472_v29 }
  0xa7   : > { %v419_v35 = vpop.permute.xlu0 %418  ;;  %v491_v36 = vpop.permute.xlu1 %490 }
  0xa8   : > { %v424_v37 = vsel %vm299_vm0, %v419_v35, 0  ;;  %v496_v38 = vsel %vm299_vm0, %v491_v36, 0 }
  0xa9   : > { %433 = vmatpush.bf16.msrb.mxu1 %v424_v37  ;;  %505 = vmatpush.bf16.msra.mxu0 %v496_v38 }
  0xab   : > { %v314_v41 = vpop.f32.mrf.mxu0 }
  0xac   : > { %847 = vmatmul.msk.bf16.vlgmr.msrb.gmra.mxu2 %vm295_vm1, %v846_v39  ;;  %845 = vmatmul.msk.bf16.vlgmr.msrb.gmra.mxu1 %vm295_vm1, %v844_v40 }
  0xb4   : > { %849 = vmatmul.msk.bf16.vlgmr.msrb.gmra.mxu3 %vm295_vm1, %v848_v42  ;;  %851 = vmatmul.msk.bf16.vlgmr.msra.gmra.mxu0 %vm295_vm1, %v850_v43 }
 0x119   : > { %v339_v59 = vpop.f32.mrf.mxu1 }
 0x11a   : > { %v343_v8 = vadd.f32 %v339_v59, %v316_v4 }
 0x11f   : > { %v363_v63 = vpop.f32.mrf.mxu2 }
 0x120   : > { %v367_v12 = vadd.f32 %v363_v63, %v343_v8 }
 0x121   : > { %v411_v1 = vpop.f32.mrf.mxu0  ;;  %v341_v2 = vpop.f32.mrf.mxu1 }
 0x122   : > { %v867_v2 = vld [vmem:[%s1237_s3 + $0x20] sm:$0xf] }
 0x127   : > { %v365_v6 = vpop.f32.mrf.mxu2  ;;  %v387_v7 = vpop.f32.mrf.mxu3 }
 0x128   : > { %v391_v13 = vadd.f32 %v387_v7, %v367_v12 }
 0x129   : > { %v413_v9 = vpop.f32.mrf.mxu0  ;;  %v435_v10 = vpop.f32.mrf.mxu1 }
 0x12a   : > { %v415_v17 = vadd.f32 %v411_v1, %v391_v13  ;;  %v865_v1 = vld [vmem:[%s1237_s3 + $0x1c] sm:$0xf] }
 0x12c   : > { %v439_v22 = vadd.f32 %v435_v10, %v415_v17 }
 0x12f   : > { %v389_v15 = vpop.f32.mrf.mxu3  ;;  %v459_v16 = vpop.f32.mrf.mxu2 }
 0x130   : > { %v463_v23 = vadd.f32 %v459_v16, %v439_v22 }
 0x131   : > { %v507_v19 = vpop.f32.mrf.mxu0  ;;  %v437_v20 = vpop.f32.mrf.mxu1 }
 0x137   : > { %v461_v24 = vpop.f32.mrf.mxu2  ;;  %v483_v25 = vpop.f32.mrf.mxu3 }
 0x138   : > { %v487_v27 = vadd.f32 %v483_v25, %v463_v23 }
 0x139   : > { %v509_v28 = vpop.f32.mrf.mxu0 }
 0x13a   : > { %v511_v29 = vadd.f32 %v507_v19, %v487_v27 }
 0x13c   : > { %v512_v30 = vmul.f32 0.01, %v511_v29 }
 0x13e   : > { %v513_v33 = vmax.f32 %v511_v29, %v512_v30 }
 0x13f   : > { %v485_v34 = vpop.f32.mrf.mxu3 }
 0x140   : > { %v514_v35 = vmul.f32 %v831_v32, %v513_v33 }
 0x142   : > { %v517_v36 = vpack.c.bf16 %v514_v35, %v514_v35 }
 0x144   : > { %519 = vrot.lane.b32.xlu0 %v517_v36, %s1000_s6 }
 0x1b6   : > { %v520_v37 = vpop.permute.xlu0 %519 }
 0x1b7   : > { %523 = vst.msk [vmem:[#allocation2] sm:$0xf] %vm522_vm9, %v520_v37 }
 0x1b8   : > { %525 = vst.msk [vmem:[#allocation2] sm:$0xf] %vm524_vm10, %v998_v18  ;;  %v527_v18 = vld [vmem:[%s1237_s3] sm:$0xf] }
 0x1bf   : > { %v526_v38 = vld [vmem:[#allocation2] sm:$0xf] }
 0x1c0   : > { %v553_v39 = vunpack.c.l.b16 %v526_v38  ;;  %v534_v40 = vsel %vm532_vm11, %v526_v38, 0 }
 0x1c1   : > { %543 = vmatpush.bf16.msra.mxu1 %v534_v40 }
 0x1c2   : > { %v554_v41 = vpack.c.b16 %v553_v39, %v553_v39 }
 0x1c4   : > { %555 = vrot.lane.b32.xlu1 %v554_v41, %s990_s12  ;;  %603 = vrot.lane.b32.xlu0 %v554_v41, %s994_s16  ;;  %s870_s16 = sshll.u32 %s1052_s22, 3 }
 0x1c5   : > { %579 = vrot.lane.b32.xlu2 %v554_v41, %s991_s13  ;;  %852 = vmatmul.msk.bf16.vlgmr.msra.gmra.mxu1 %vm528_vm12, %v527_v18 }
 0x1cc   : > { %627 = vrot.lane.b32.xlu1 %v554_v41, %s993_s15  ;;  %675 = vrot.lane.b32.xlu0 %v554_v41, %s992_s14  ;;  %s215_s14 = sand.u32 1, %s980_s19  }
 0x1cd   : > { %651 = vrot.lane.b32.xlu2 %v554_v41, %s996_s23  ;;  %s828_s15 = sshll.u32 %s215_s14, 3  ;;  %s750_s22 = scalar_lea.sflag [#allocation4], %s215_s14 }
 0x1ce   : > { %s217_s9 = scalar_lea.vmem [#allocation3], %s828_s15 }
 0x1cf   : > { %s762_s10 = sshll.u32 %s217_s9, 4  ;;  %s763_s10 = int_to_ptr.vmem [resolvable:$true] %s762_s10 }
 0x1d4   : > { %699 = vrot.lane.b32.xlu1 %v554_v41, %s995_s17  ;;  %233 = vperm.xlu0 %925, %v230_v45  }
 0x1d5   : > { %723 = vrot.lane.b32.xlu2 %v554_v41, %s997_s25  ;;  %s760_s25 = scalar_lea.hbm %s1239_s5, %s870_s16 }
 0x1d6   : > { %s764_s11 = sshll.u32 %s760_s25, 4  ;;  %s765_s11 = int_to_ptr.hbm [resolvable:$true] %s764_s11 }
 0x1d7   : > { %s940_s26 = sshra.s32 %s765_s11, 4  ;;  %s941_s26 = int_to_ptr.hbm [resolvable:$true] %s940_s26 }
 0x1d8   : > { %s942_s30 = scalar_lea.hbm %s941_s26, 8  ;;  %p947_p0 = scmp.lt.s32.totalorder %s941_s26, %s1239_s5 }
 0x1d9   : > { %p943_p11 = scmp.ne.s32.totalorder %s941_s26, %s942_s30  ;;  %p948_p1 = scmp.lt.s32.totalorder %s946_s8, %s942_s30 }
 0x1db   : > { %p944_p12 = pnand %p943_p11, %p1069_p5  ;;  %p949_p2 = por %p948_p1, %p947_p0 }
 0x1dd   : > { %p945_p13 = pneg %p944_p12 }
 0x1df   : > { %p950_p3 = pnand %p949_p2, %p945_p13 }
 0x21f   : > { %v580_v42 = vpop.permute.xlu2 %579 }
 0x220   : > { %v585_v43 = vsel %vm532_vm11, %v580_v42, 0 }
 0x221   : > { %594 = vmatpush.bf16.msra.mxu3 %v585_v43 }
 0x224   : > { %856 = vmatmul.msk.bf16.vlgmr.msra.gmra.mxu3 %vm528_vm12, %v855_v44 }
 0x227   : > { %v652_v46 = vpop.permute.xlu2 %651 }
 0x228   : > { %v657_v49 = vsel %vm532_vm11, %v652_v46, 0 }
 0x22f   : > { %v724_v54 = vpop.permute.xlu2 %723 }
 0x230   : > { %v729_v57 = vsel %vm532_vm11, %v724_v54, 0 }
 0x236   : > { %v556_v47 = vpop.permute.xlu1 %555  ;;  %v604_v48 = vpop.permute.xlu0 %603 }
 0x237   : > { %v561_v50 = vsel %vm532_vm11, %v556_v47, 0  ;;  %v609_v51 = vsel %vm532_vm11, %v604_v48, 0 }
 0x238   : > { %570 = vmatpush.bf16.msra.mxu2 %v561_v50  ;;  %618 = vmatpush.bf16.msrb.mxu0 %v609_v51 }
 0x23b   : > { %854 = vmatmul.msk.bf16.vlgmr.msra.gmra.mxu2 %vm528_vm12, %v853_v52  ;;  %858 = vmatmul.msk.bf16.vlgmr.msrb.gmra.mxu0 %vm528_vm12, %v857_v53 }
 0x23c   : > { %666 = vmatpush.bf16.msrb.mxu2 %v657_v49 }
 0x23e   : > { %v628_v55 = vpop.permute.xlu1 %627  ;;  %v676_v56 = vpop.permute.xlu0 %675 }
 0x23f   : > { %v633_v58 = vsel %vm532_vm11, %v628_v55, 0  ;;  %v681_v59 = vsel %vm532_vm11, %v676_v56, 0 }
 0x240   : > { %642 = vmatpush.bf16.msrb.mxu1 %v633_v58  ;;  %690 = vmatpush.bf16.msrb.mxu3 %v681_v59 }
 0x242   : > { %v545_v3 = vpop.f32.mrf.mxu1 }
 0x243   : > { %860 = vmatmul.msk.bf16.vlgmr.msrb.gmra.mxu1 %vm528_vm12, %v859_v60  ;;  %864 = vmatmul.msk.bf16.vlgmr.msrb.gmra.mxu3 %vm528_vm12, %v863_v61 }
 0x244   : > { %738 = vmatpush.bf16.msra.mxu1 %v729_v57 }
 0x246   : > { %v700_v62 = vpop.permute.xlu1 %699  ;;  %v234_v8 = vpop.permute.xlu0 %233 }
 0x247   : > { %v705_v63 = vsel %vm532_vm11, %v700_v62, 0  ;;  %v549_v10 = vadd.f32 %v545_v3, %v234_v8 }
 0x248   : > { %714 = vmatpush.bf16.msra.mxu0 %v705_v63 }
 0x24a   : > { %v547_v4 = vpop.f32.mrf.mxu1 }
 0x24b   : > { %862 = vmatmul.msk.bf16.vlgmr.msrb.gmra.mxu2 %vm528_vm12, %v861_v0  ;;  %866 = vmatmul.msk.bf16.vlgmr.msra.gmra.mxu0 %vm528_vm12, %v865_v1 }
 0x253   : > { %868 = vmatmul.msk.bf16.vlgmr.msra.gmra.mxu1 %vm528_vm12, %v867_v2 }
 0x2a7   : > { %v596_v5 = vpop.f32.mrf.mxu3 }
 0x2af   : > { %v598_v6 = vpop.f32.mrf.mxu3 }
 0x2b8   : > { %v620_v7 = vpop.f32.mrf.mxu0 }
 0x2be   : > { %v572_v9 = vpop.f32.mrf.mxu2 }
 0x2bf   : > { %v576_v13 = vadd.f32 %v572_v9, %v549_v10 }
 0x2c0   : > { %v644_v11 = vpop.f32.mrf.mxu1  ;;  %v622_v12 = vpop.f32.mrf.mxu0 }
 0x2c1   : > { %v600_v14 = vadd.f32 %v596_v5, %v576_v13 }
 0x2c3   : > { %v624_v20 = vadd.f32 %v620_v7, %v600_v14 }
 0x2c5   : > { %v648_v21 = vadd.f32 %v644_v11, %v624_v20 }
 0x2c6   : > { %v574_v15 = vpop.f32.mrf.mxu2  ;;  %v692_v16 = vpop.f32.mrf.mxu3 }
 0x2c8   : > { %v646_v17 = vpop.f32.mrf.mxu1  ;;  %v716_v19 = vpop.f32.mrf.mxu0 }
 0x2ce   : > { %v668_v22 = vpop.f32.mrf.mxu2  ;;  %v694_v23 = vpop.f32.mrf.mxu3 }
 0x2cf   : > { %v672_v24 = vadd.f32 %v668_v22, %v648_v21 }
 0x2d0   : > { %v740_v25 = vpop.f32.mrf.mxu1  ;;  %v718_v26 = vpop.f32.mrf.mxu0 }
 0x2d1   : > { %v696_v27 = vadd.f32 %v692_v16, %v672_v24 }
 0x2d3   : > { %v720_v28 = vadd.f32 %v716_v19, %v696_v27 }
 0x2d5   : > { %v744_v29 = vadd.f32 %v740_v25, %v720_v28 }
 0x2d6   : > { %v670_v30 = vpop.f32.mrf.mxu2 }
 0x2d7   : > { %v745_v31 = vmul.f32 0.01, %v744_v29 }
 0x2d8   : > { %v742_v32 = vpop.f32.mrf.mxu1 }
 0x2d9   : > { %v746_v33 = vmax.f32 %v744_v29, %v745_v31 }
 0x2db   : > { %748 = vst.msk [vmem:[%s217_s9] sm:$0xff] %vm747_vm13, %v746_v33 }
 0x2dc   : > { %953 = shalt.err (!%p950_p3)
}
 0x2dd   : > { %874 = dma.vmem_to_hbm [thread:$0]  (%p1069_p5), %s763_s10, 128, %s765_s11, %s750_s22  }
 0x2de PF: > { %p880_p4 = scmp.ge.s32.totalorder %s988_s21, 2  ;;  %s776_s14 = sand.u32 1, %s976_s18  }
 0x2df   : > { %s777_s15 = scalar_lea.sflag [#allocation4], %s776_s14 }
 0x2e0   : > { %p877_p7 = pnand %p880_p4, %p1073_p6 }
 0x2e2   : > { %p878_p8 = pneg %p877_p7 }
 0x2e4   : > { %971 = dma.done.wait (%p878_p8), %s777_s15, 128  }
 0x2e5   : > { %973 = vsyncadd (%p878_p8), %s777_s15, 4294967168  ;;  %p15_p9 = scmp.ge.s32.totalorder %s1056_s24, 4   ;;  %s1242_s18 = smov %s980_s19 }
 0x2e6   : > { %s1243_s19 = smov %s984_s20  ;;  %s1244_s20 = smov %s1067_s27 }
 0x2e7   : > { %s1245_s21 = smov %s1056_s24  ;;  %17 = sbr.rel (!%p15_p9) target bundleno = 3 (0x3), region = 94 }
 0x2ec   :  { %783 = vsyncpa [#allocation4], 1 }
 0x2ed   :  { %785 = vsyncpa [#allocation4 + $0x1], 1 }

</bundles_post_ra>
